<compile_context>
chip_gen: v7x
topology: tpu7x:2x2x1
jax: 0.10.0
libtpu: 0.0.40
codegen_flags: <defaults>
</compile_context>

<pallas_src>
import functools

import jax
import jax.numpy as jnp
from jax.experimental import pallas as pl
from jax.experimental.pallas import tpu as pltpu


def _round_up(x, m):
    return ((x + m - 1) // m) * m


def _bf16_elementwise_ok():
    """bf16 VPU/EUP exists on v6e/v7x; keep the f32 element-wise path on v4/v5e/v5p."""
    try:
        kind = jax.devices()[0].device_kind.lower()
    except Exception:
        return False
    return ("v6" in kind) or ("v7" in kind)


def mlp_kernel(x_ref, *refs, sub_b, activation, compute_dtype):
    """Fused feature-major MLP block.

    x_ref : (din, BLOCK_B) f32 input tile (batch on the 128-lane axis).
    refs  : (w0, b0, w1, b1, ..., wL, bL, out_ref)
            w_j : (dout_j, din_j)  native torch nn.Linear layout
            b_j : (dout_j, 1)
            layer 0 and layer L are f32 (they carry the folded (de)normalization);
            hidden layers are `compute_dtype` (bf16 on v6e/v7x, f32 on v5e).
    The inner pl.loop walks `sub_b`-wide column sub-tiles so a large BLOCK_B amortizes
    grid-step overhead without blowing up vreg live ranges.
    """
    out_ref = refs[-1]
    param_refs = refs[:-1]
    n_layers = len(param_refs) // 2

    if activation == "tanh":
        act = jnp.tanh
    else:  # relu.  NOTE: zero-padded hidden channels require act(0) == 0.
        act = lambda t: jnp.maximum(t, 0.0)

    din, block_b = x_ref.shape
    n_sub = block_b // sub_b

    @pl.loop(0, n_sub)
    def _(s):
        col = pl.multiple_of(s * sub_b, sub_b)
        x = x_ref[:, pl.ds(col, sub_b)]                       # (din, sub_b) f32

        # ---- layer 0: K = input_dim is tiny -> VPU broadcast FMAs (f32). ----
        w0 = param_refs[0][...]                               # (h0, din) f32
        b0 = param_refs[1][...]                               # (h0, 1)   f32
        h = b0
        for k in range(din):
            h = h + w0[:, k:k + 1] * x[k:k + 1, :]            # broadcast FMA
        h = act(h.astype(compute_dtype))

        # ---- hidden layers: MXU matmul, bias add + tanh in compute_dtype. ----
        for j in range(1, n_layers - 1):
            w = param_refs[2 * j][...]                        # (hj, hj-1) compute_dtype
            b = param_refs[2 * j + 1][...]                    # (hj, 1)    compute_dtype
            h = jnp.dot(w, h, preferred_element_type=compute_dtype) + b
            h = act(h)

        # nn.Dropout(fdrop=0) is the identity -> nothing to do.
        # TODO(synk): fdrop > 0 (training-mode dropout) would need pltpu.prng_seed/prng_random_bits.

        # ---- last layer: f32 weights (folded output de-normalization). ----
        wl = param_refs[-2][...]                              # (dout, h_last) f32
        bl = param_refs[-1][...]                              # (dout, 1)      f32
        y = jnp.dot(wl, h.astype(jnp.float32),
                    preferred_element_type=jnp.float32) + bl
        out_ref[:, pl.ds(col, sub_b)] = y.astype(out_ref.dtype)


def prepare_params(bounds, params, *, compute_dtype=jnp.float32):
    """Fold the affine (de)normalization into the first/last linear layers, zero-pad
    hidden widths to a TPU-friendly multiple and cast hidden weights to the MXU dtype.

    params: flat [w0, b0, ..., wL, bL]; w_j is (out_features, in_features) = native
            torch nn.Linear layout (no transpose needed), b_j is (out,) or (out, 1).
    bounds: (lb, ub, ylb, yub); each may be a scalar or a per-feature vector.
    NOTE: degenerate bounds (ub == lb) divide by zero, exactly like the torch module.
    """
    lb, ub, ylb, yub = (jnp.asarray(b, jnp.float32) for b in bounds)
    n_layers = len(params) // 2
    assert n_layers >= 2, "need at least one hidden layer"
    ws = [jnp.asarray(params[2 * j], jnp.float32) for j in range(n_layers)]
    bs = [jnp.asarray(params[2 * j + 1], jnp.float32).reshape(-1, 1)
          for j in range(n_layers)]

    # X_norm = scale_in * X + shift_in  (folded exactly into layer 0).
    scale_in = 2.0 / (ub - lb)
    shift_in = -lb * scale_in - 1.0
    din0 = ws[0].shape[1]
    scale_in_row = jnp.broadcast_to(scale_in.reshape(1, -1), (1, din0))
    shift_in_row = jnp.broadcast_to(shift_in.reshape(1, -1), (1, din0))
    bs[0] = bs[0] + jnp.sum(ws[0] * shift_in_row, axis=1, keepdims=True)
    ws[0] = ws[0] * scale_in_row

    # Y = scale_out * Y_raw + shift_out  (folded exactly into the last layer).
    scale_out = 0.5 * (yub - ylb)
    shift_out = scale_out + ylb
    dout_l = ws[-1].shape[0]
    scale_out_col = jnp.broadcast_to(scale_out.reshape(-1, 1), (dout_l, 1))
    shift_out_col = jnp.broadcast_to(shift_out.reshape(-1, 1), (dout_l, 1))
    ws[-1] = ws[-1] * scale_out_col
    bs[-1] = bs[-1] * scale_out_col + shift_out_col

    # Zero-pad hidden widths to the sublane multiple of the element-wise dtype
    # (40 stays 40 for f32, 40 -> 48 for bf16).  Padded channels have zero weight/bias
    # and act(0) == 0 for tanh/relu, so they stay exactly zero and never leak into
    # real outputs.  (Invariant: do NOT extend to activations with act(0) != 0.)
    pad_to = 8 * (4 // jnp.dtype(compute_dtype).itemsize)
    out_dims = [_round_up(w.shape[0], pad_to) if j < n_layers - 1 else w.shape[0]
                for j, w in enumerate(ws)]
    in_dims = [w.shape[1] if j == 0 else out_dims[j - 1] for j, w in enumerate(ws)]

    prepped = []
    for j, (w, b) in enumerate(zip(ws, bs)):
        w = jnp.pad(w, ((0, out_dims[j] - w.shape[0]), (0, in_dims[j] - w.shape[1])))
        b = jnp.pad(b, ((0, out_dims[j] - b.shape[0]), (0, 0)))
        # First & last layers stay f32 (carry the folded (de)normalization scales).
        dt = jnp.float32 if (j == 0 or j == n_layers - 1) else compute_dtype
        prepped += [w.astype(dt), b.astype(dt)]
    return prepped


def net_forward(bounds, x, params, *, block_b=2048, sub_b=256,
                activation="tanh", compute_dtype=None):
    """Forward pass of `Net`.  x: (N, input_dim) f32 -> (N, output_dim) f32."""
    if compute_dtype is None:
        compute_dtype = jnp.bfloat16 if _bf16_elementwise_ok() else jnp.float32
    prepped = prepare_params(bounds, params, compute_dtype=compute_dtype)
    din = prepped[0].shape[1]
    dout = prepped[-2].shape[0]

    n = x.shape[0]
    assert block_b % sub_b == 0 and sub_b % 128 == 0
    # Large grid tile (amortize per-step overhead) but never bigger than the padded
    # problem; the in-kernel pl.loop walks sub_b-wide column sub-tiles.
    eff_block_b = max(sub_b, min(block_b, _round_up(n, sub_b)))
    n_blocks = pl.cdiv(n, eff_block_b)
    n_pad = n_blocks * eff_block_b

    # Feature-major: batch on the lane axis; zero-pad batch up to a whole grid.
    x_t = jnp.pad(x.astype(jnp.float32).T, ((0, 0), (0, n_pad - n)))

    flops = 2 * n_pad * sum(int(prepped[2 * j].size) for j in range(len(prepped) // 2))
    transcendentals = n_pad * sum(int(prepped[2 * j].shape[0])
                                  for j in range(len(prepped) // 2 - 1))
    bytes_accessed = 4 * n_pad * (din + dout) + sum(int(p.size) * p.dtype.itemsize
                                                    for p in prepped)

    # Weights/biases: full-array blocks with a constant index map -> resident in VMEM.
    param_specs = [pl.BlockSpec(p.shape, lambda i: (0, 0)) for p in prepped]

    kernel = functools.partial(mlp_kernel, sub_b=sub_b, activation=activation,
                               compute_dtype=compute_dtype)

    out_t = pl.pallas_call(
        kernel,
        out_shape=jax.ShapeDtypeStruct((dout, n_pad), jnp.float32),
        grid_spec=pltpu.PrefetchScalarGridSpec(
            num_scalar_prefetch=0,
            grid=(n_blocks,),
            in_specs=[pl.BlockSpec((din, eff_block_b), lambda i: (0, i))] + param_specs,
            out_specs=pl.BlockSpec((dout, eff_block_b), lambda i: (0, i)),
        ),
        compiler_params=pltpu.CompilerParams(
            dimension_semantics=("parallel",),  # shard batch grid across TCs (v7x)
        ),
        cost_estimate=pl.CostEstimate(flops=int(flops),
                                      transcendentals=int(transcendentals),
                                      bytes_accessed=int(bytes_accessed)),
    )(x_t, *prepped)

    return out_t.T[:n]


# ----------------------------- test helpers ----------------------------------


def make_params(key, dims):
    """nn.Linear init U(-1/sqrt(fan_in), 1/sqrt(fan_in)); native torch (out, in) layout."""
    params = []
    for din, dout in zip(dims[:-1], dims[1:]):
        key, kw, kb = jax.random.split(key, 3)
        bnd = 1.0 / jnp.sqrt(jnp.float32(din))
        w = jax.random.uniform(kw, (dout, din), jnp.float32, -bnd, bnd)
        b = jax.random.uniform(kb, (dout, 1), jnp.float32, -bnd, bnd)
        params += [w, b]
    return params


def reference_forward(bounds, x, params):
    """Pure-JAX f32 reference matching the torch module line for line."""
    lb, ub, ylb, yub = (jnp.asarray(b, jnp.float32) for b in bounds)
    h = 2.0 * (x - lb) / (ub - lb) - 1.0
    n_layers = len(params) // 2
    for j in range(n_layers):
        w, b = params[2 * j], params[2 * j + 1]
        h = h @ w.T + b.reshape(1, -1)
        if j < n_layers - 1:
            h = jnp.tanh(h)
    return 0.5 * ((h + 1.0) * (yub - ylb)) + ylb


def prepped_reference(prepped, x, *, compute_dtype, activation="tanh"):
    """Same math as the kernel (folded/padded params, mixed-precision chain)."""
    act = jnp.tanh if activation == "tanh" else (lambda t: jnp.maximum(t, 0.0))
    n_layers = len(prepped) // 2
    h = x.astype(jnp.float32).T
    h = prepped[0] @ h + prepped[1]
    h = act(h.astype(compute_dtype))
    for j in range(1, n_layers - 1):
        w, b = prepped[2 * j], prepped[2 * j + 1]
        h = act(jnp.dot(w, h, preferred_element_type=compute_dtype) + b)
    y = jnp.dot(prepped[-2], h.astype(jnp.float32),
                preferred_element_type=jnp.float32) + prepped[-1]
    return y.T


if __name__ == "__main__":
    key = jax.random.PRNGKey(0)

    # Module defaults: Uvec = [40]*5, tanh activation, dropout p=0 (identity),
    # input_dim=2 (e.g. (x, t) collocation points), output_dim=1.
    input_dim, output_dim = 2, 1
    Uvec = [40] * 5
    dims = [input_dim] + Uvec + [output_dim]
    # N pads to 4096 -> an even 2-step grid of BLOCK_B=2048 (keeps both v7x TCs busy)
    # and exercises batch padding (4000 is not a multiple of 2048).
    N = 4000

    k_x, k_p = jax.random.split(key)
    x = jax.random.uniform(k_x, (N, input_dim), jnp.float32)
    params = make_params(k_p, dims)

    # bounds = (lb, ub, ylb, yub); must be non-degenerate (the torch default (0,0,0,0)
    # divides by zero in forward(), same here).  Entries may be per-feature vectors.
    bounds = (jnp.float32(0.0), jnp.float32(1.0), jnp.float32(-1.0), jnp.float32(1.0))

    # NOTE: self.dpar is a learnable PDE parameter that forward() never uses; omitted.
    out = jax.jit(net_forward)(bounds, x, params)
    out = jax.block_until_ready(out)
    assert out.shape == (N, output_dim)

    # Tight check vs the identical math in plain JAX (folded params, same dtypes).
    cd = jnp.bfloat16 if _bf16_elementwise_ok() else jnp.float32
    prepped = prepare_params(bounds, params, compute_dtype=cd)
    ref_q = prepped_reference(prepped, x, compute_dtype=cd)
    assert jnp.allclose(out, ref_q, atol=3e-2, rtol=3e-2), \
        float(jnp.max(jnp.abs(out - ref_q)))

    # Semantic check vs the full-f32 torch-equivalent reference (bf16 activations on
    # v6e/v7x introduce ~1e-2-scale differences at most).
    ref = reference_forward(bounds, x, params)
    assert jnp.allclose(out, ref, atol=6e-2, rtol=6e-2), \
        float(jnp.max(jnp.abs(out - ref)))

    print("KERNEL_OK")
</pallas_src>

<mosaic_0001>
module attributes {stable_mosaic.version = 11 : i64} {
  func.func @mlp_kernel(%arg0: i32, %arg1: memref<2x2048xf32, #tpu.memory_space<vmem>>, %arg2: memref<40x2xf32, #tpu.memory_space<vmem>>, %arg3: memref<40x1xf32, #tpu.memory_space<vmem>>, %arg4: memref<40x40xf32, #tpu.memory_space<vmem>>, %arg5: memref<40x1xf32, #tpu.memory_space<vmem>>, %arg6: memref<40x40xf32, #tpu.memory_space<vmem>>, %arg7: memref<40x1xf32, #tpu.memory_space<vmem>>, %arg8: memref<40x40xf32, #tpu.memory_space<vmem>>, %arg9: memref<40x1xf32, #tpu.memory_space<vmem>>, %arg10: memref<40x40xf32, #tpu.memory_space<vmem>>, %arg11: memref<40x1xf32, #tpu.memory_space<vmem>>, %arg12: memref<1x40xf32, #tpu.memory_space<vmem>>, %arg13: memref<1x1xf32, #tpu.memory_space<vmem>>, %arg14: memref<1x2048xf32, #tpu.memory_space<vmem>>) attributes {dimension_semantics = [#tpu.dimension_semantics<parallel>], iteration_bounds = array<i64: 2>, scalar_prefetch = 0 : i64, scratch_operands = 0 : i64, tpu.core_type = #tpu.core_type<tc>, window_params = [{transform_indices = @transform_0, window_bounds = array<i64: 2, 2048>}, {pipeline_mode = #tpu.pipeline_mode<synchronous>, transform_indices = @transform_1, window_bounds = array<i64: 40, 2>}, {pipeline_mode = #tpu.pipeline_mode<synchronous>, transform_indices = @transform_2, window_bounds = array<i64: 40, 1>}, {pipeline_mode = #tpu.pipeline_mode<synchronous>, transform_indices = @transform_3, window_bounds = array<i64: 40, 40>}, {pipeline_mode = #tpu.pipeline_mode<synchronous>, transform_indices = @transform_4, window_bounds = array<i64: 40, 1>}, {pipeline_mode = #tpu.pipeline_mode<synchronous>, transform_indices = @transform_5, window_bounds = array<i64: 40, 40>}, {pipeline_mode = #tpu.pipeline_mode<synchronous>, transform_indices = @transform_6, window_bounds = array<i64: 40, 1>}, {pipeline_mode = #tpu.pipeline_mode<synchronous>, transform_indices = @transform_7, window_bounds = array<i64: 40, 40>}, {pipeline_mode = #tpu.pipeline_mode<synchronous>, transform_indices = @transform_8, window_bounds = array<i64: 40, 1>}, {pipeline_mode = #tpu.pipeline_mode<synchronous>, transform_indices = @transform_9, window_bounds = array<i64: 40, 40>}, {pipeline_mode = #tpu.pipeline_mode<synchronous>, transform_indices = @transform_10, window_bounds = array<i64: 40, 1>}, {pipeline_mode = #tpu.pipeline_mode<synchronous>, transform_indices = @transform_11, window_bounds = array<i64: 1, 40>}, {pipeline_mode = #tpu.pipeline_mode<synchronous>, transform_indices = @transform_12, window_bounds = array<i64: 1, 1>}, {transform_indices = @transform_13, window_bounds = array<i64: 1, 2048>}]} {
    %c0_i32 = arith.constant 0 : i32
    %c8_i32 = arith.constant 8 : i32
    %0 = arith.addi %c0_i32, %c8_i32 : i32
    %c1_i32 = arith.constant 1 : i32
    scf.for %arg15 = %c0_i32 to %0 step %c1_i32  : i32 {
      %c1_i32_1 = arith.constant 1 : i32
      %1 = arith.muli %arg15, %c1_i32_1 : i32
      %c0_i32_2 = arith.constant 0 : i32
      %2 = arith.addi %c0_i32_2, %1 : i32
      %c256_i32 = arith.constant 256 : i32
      %3 = arith.muli %2, %c256_i32 : i32
      %4 = tpu.assume_multiple %3, 256 : i32
      %c0 = arith.constant 0 : index
      %5 = arith.index_cast %4 : i32 to index
      %6 = vector.load %arg1[%c0, %5] : memref<2x2048xf32, #tpu.memory_space<vmem>>, vector<2x256xf32>
      %c0_3 = arith.constant 0 : index
      %c0_4 = arith.constant 0 : index
      %7 = vector.load %arg2[%c0_3, %c0_4] : memref<40x2xf32, #tpu.memory_space<vmem>>, vector<40x2xf32>
      %c0_5 = arith.constant 0 : index
      %c0_6 = arith.constant 0 : index
      %8 = vector.load %arg3[%c0_5, %c0_6] : memref<40x1xf32, #tpu.memory_space<vmem>>, vector<40x1xf32>
      %9 = vector.extract_strided_slice %7 {offsets = [0, 0], sizes = [40, 1], strides = [1, 1]} : vector<40x2xf32> to vector<40x1xf32>
      %10 = vector.extract_strided_slice %6 {offsets = [0, 0], sizes = [1, 256], strides = [1, 1]} : vector<2x256xf32> to vector<1x256xf32>
      %11 = vector.broadcast %9 : vector<40x1xf32> to vector<40x256xf32>
      %12 = vector.broadcast %10 : vector<1x256xf32> to vector<40x256xf32>
      %13 = arith.mulf %11, %12 : vector<40x256xf32>
      %14 = vector.broadcast %8 : vector<40x1xf32> to vector<40x256xf32>
      %15 = arith.addf %14, %13 : vector<40x256xf32>
      %16 = vector.extract_strided_slice %7 {offsets = [0, 1], sizes = [40, 1], strides = [1, 1]} : vector<40x2xf32> to vector<40x1xf32>
      %17 = vector.extract_strided_slice %6 {offsets = [1, 0], sizes = [1, 256], strides = [1, 1]} : vector<2x256xf32> to vector<1x256xf32>
      %18 = vector.broadcast %16 : vector<40x1xf32> to vector<40x256xf32>
      %19 = vector.broadcast %17 : vector<1x256xf32> to vector<40x256xf32>
      %20 = arith.mulf %18, %19 : vector<40x256xf32>
      %21 = arith.addf %15, %20 : vector<40x256xf32>
      %22 = math.tanh %21 : vector<40x256xf32>
      %c0_7 = arith.constant 0 : index
      %c0_8 = arith.constant 0 : index
      %23 = vector.load %arg4[%c0_7, %c0_8] : memref<40x40xf32, #tpu.memory_space<vmem>>, vector<40x40xf32>
      %c0_9 = arith.constant 0 : index
      %c0_10 = arith.constant 0 : index
      %24 = vector.load %arg5[%c0_9, %c0_10] : memref<40x1xf32, #tpu.memory_space<vmem>>, vector<40x1xf32>
      %cst = arith.constant dense<0.000000e+00> : vector<40x256xf32>
      %25 = tpu.matmul %23, %22, %cst {dimension_numbers = #tpu.dot_dimension_numbers<[1], [0], [0], [1], [0, 0, 1, 1], [], []>} : vector<40x40xf32>, vector<40x256xf32>, vector<40x256xf32> -> vector<40x256xf32>
      %26 = vector.broadcast %24 : vector<40x1xf32> to vector<40x256xf32>
      %27 = arith.addf %25, %26 : vector<40x256xf32>
      %28 = math.tanh %27 : vector<40x256xf32>
      %c0_11 = arith.constant 0 : index
      %c0_12 = arith.constant 0 : index
      %29 = vector.load %arg6[%c0_11, %c0_12] : memref<40x40xf32, #tpu.memory_space<vmem>>, vector<40x40xf32>
      %c0_13 = arith.constant 0 : index
      %c0_14 = arith.constant 0 : index
      %30 = vector.load %arg7[%c0_13, %c0_14] : memref<40x1xf32, #tpu.memory_space<vmem>>, vector<40x1xf32>
      %cst_15 = arith.constant dense<0.000000e+00> : vector<40x256xf32>
      %31 = tpu.matmul %29, %28, %cst_15 {dimension_numbers = #tpu.dot_dimension_numbers<[1], [0], [0], [1], [0, 0, 1, 1], [], []>} : vector<40x40xf32>, vector<40x256xf32>, vector<40x256xf32> -> vector<40x256xf32>
      %32 = vector.broadcast %30 : vector<40x1xf32> to vector<40x256xf32>
      %33 = arith.addf %31, %32 : vector<40x256xf32>
      %34 = math.tanh %33 : vector<40x256xf32>
      %c0_16 = arith.constant 0 : index
      %c0_17 = arith.constant 0 : index
      %35 = vector.load %arg8[%c0_16, %c0_17] : memref<40x40xf32, #tpu.memory_space<vmem>>, vector<40x40xf32>
      %c0_18 = arith.constant 0 : index
      %c0_19 = arith.constant 0 : index
      %36 = vector.load %arg9[%c0_18, %c0_19] : memref<40x1xf32, #tpu.memory_space<vmem>>, vector<40x1xf32>
      %cst_20 = arith.constant dense<0.000000e+00> : vector<40x256xf32>
      %37 = tpu.matmul %35, %34, %cst_20 {dimension_numbers = #tpu.dot_dimension_numbers<[1], [0], [0], [1], [0, 0, 1, 1], [], []>} : vector<40x40xf32>, vector<40x256xf32>, vector<40x256xf32> -> vector<40x256xf32>
      %38 = vector.broadcast %36 : vector<40x1xf32> to vector<40x256xf32>
      %39 = arith.addf %37, %38 : vector<40x256xf32>
      %40 = math.tanh %39 : vector<40x256xf32>
      %c0_21 = arith.constant 0 : index
      %c0_22 = arith.constant 0 : index
      %41 = vector.load %arg10[%c0_21, %c0_22] : memref<40x40xf32, #tpu.memory_space<vmem>>, vector<40x40xf32>
      %c0_23 = arith.constant 0 : index
      %c0_24 = arith.constant 0 : index
      %42 = vector.load %arg11[%c0_23, %c0_24] : memref<40x1xf32, #tpu.memory_space<vmem>>, vector<40x1xf32>
      %cst_25 = arith.constant dense<0.000000e+00> : vector<40x256xf32>
      %43 = tpu.matmul %41, %40, %cst_25 {dimension_numbers = #tpu.dot_dimension_numbers<[1], [0], [0], [1], [0, 0, 1, 1], [], []>} : vector<40x40xf32>, vector<40x256xf32>, vector<40x256xf32> -> vector<40x256xf32>
      %44 = vector.broadcast %42 : vector<40x1xf32> to vector<40x256xf32>
      %45 = arith.addf %43, %44 : vector<40x256xf32>
      %46 = math.tanh %45 : vector<40x256xf32>
      %c0_26 = arith.constant 0 : index
      %c0_27 = arith.constant 0 : index
      %47 = vector.load %arg12[%c0_26, %c0_27] : memref<1x40xf32, #tpu.memory_space<vmem>>, vector<1x40xf32>
      %c0_28 = arith.constant 0 : index
      %c0_29 = arith.constant 0 : index
      %48 = vector.load %arg13[%c0_28, %c0_29] : memref<1x1xf32, #tpu.memory_space<vmem>>, vector<1x1xf32>
      %cst_30 = arith.constant dense<0.000000e+00> : vector<1x256xf32>
      %49 = tpu.matmul %47, %46, %cst_30 {dimension_numbers = #tpu.dot_dimension_numbers<[1], [0], [0], [1], [0, 0, 1, 1], [], []>} : vector<1x40xf32>, vector<40x256xf32>, vector<1x256xf32> -> vector<1x256xf32>
      %50 = vector.broadcast %48 : vector<1x1xf32> to vector<1x256xf32>
      %51 = arith.addf %49, %50 : vector<1x256xf32>
      %c0_31 = arith.constant 0 : index
      %52 = arith.index_cast %4 : i32 to index
      %53 = vector.load %arg14[%c0_31, %52] : memref<1x2048xf32, #tpu.memory_space<vmem>>, vector<1x256xf32>
      tpu.vector_store %arg14[%c0_31, %52], %51 {strides = array<i32>} : memref<1x2048xf32, #tpu.memory_space<vmem>>, vector<1x256xf32>,
    }
    %c8_i32_0 = arith.constant 8 : i32
    return
  }
  func.func @transform_0(%arg0: i32) -> (i32, i32) {
    %c0_i32 = arith.constant 0 : i32
    %c0_i32_0 = arith.constant 0 : i32
    return %c0_i32, %arg0 : i32, i32
  }
  func.func @transform_1(%arg0: i32) -> (i32, i32) {
    %c0_i32 = arith.constant 0 : i32
    %c0_i32_0 = arith.constant 0 : i32
    %c0_i32_1 = arith.constant 0 : i32
    return %c0_i32, %c0_i32_0 : i32, i32
  }
  func.func @transform_2(%arg0: i32) -> (i32, i32) {
    %c0_i32 = arith.constant 0 : i32
    %c0_i32_0 = arith.constant 0 : i32
    %c0_i32_1 = arith.constant 0 : i32
    return %c0_i32, %c0_i32_0 : i32, i32
  }
  func.func @transform_3(%arg0: i32) -> (i32, i32) {
    %c0_i32 = arith.constant 0 : i32
    %c0_i32_0 = arith.constant 0 : i32
    %c0_i32_1 = arith.constant 0 : i32
    return %c0_i32, %c0_i32_0 : i32, i32
  }
  func.func @transform_4(%arg0: i32) -> (i32, i32) {
    %c0_i32 = arith.constant 0 : i32
    %c0_i32_0 = arith.constant 0 : i32
    %c0_i32_1 = arith.constant 0 : i32
    return %c0_i32, %c0_i32_0 : i32, i32
  }
  func.func @transform_5(%arg0: i32) -> (i32, i32) {
    %c0_i32 = arith.constant 0 : i32
    %c0_i32_0 = arith.constant 0 : i32
    %c0_i32_1 = arith.constant 0 : i32
    return %c0_i32, %c0_i32_0 : i32, i32
  }
  func.func @transform_6(%arg0: i32) -> (i32, i32) {
    %c0_i32 = arith.constant 0 : i32
    %c0_i32_0 = arith.constant 0 : i32
    %c0_i32_1 = arith.constant 0 : i32
    return %c0_i32, %c0_i32_0 : i32, i32
  }
  func.func @transform_7(%arg0: i32) -> (i32, i32) {
    %c0_i32 = arith.constant 0 : i32
    %c0_i32_0 = arith.constant 0 : i32
    %c0_i32_1 = arith.constant 0 : i32
    return %c0_i32, %c0_i32_0 : i32, i32
  }
  func.func @transform_8(%arg0: i32) -> (i32, i32) {
    %c0_i32 = arith.constant 0 : i32
    %c0_i32_0 = arith.constant 0 : i32
    %c0_i32_1 = arith.constant 0 : i32
    return %c0_i32, %c0_i32_0 : i32, i32
  }
  func.func @transform_9(%arg0: i32) -> (i32, i32) {
    %c0_i32 = arith.constant 0 : i32
    %c0_i32_0 = arith.constant 0 : i32
    %c0_i32_1 = arith.constant 0 : i32
    return %c0_i32, %c0_i32_0 : i32, i32
  }
  func.func @transform_10(%arg0: i32) -> (i32, i32) {
    %c0_i32 = arith.constant 0 : i32
    %c0_i32_0 = arith.constant 0 : i32
    %c0_i32_1 = arith.constant 0 : i32
    return %c0_i32, %c0_i32_0 : i32, i32
  }
  func.func @transform_11(%arg0: i32) -> (i32, i32) {
    %c0_i32 = arith.constant 0 : i32
    %c0_i32_0 = arith.constant 0 : i32
    %c0_i32_1 = arith.constant 0 : i32
    return %c0_i32, %c0_i32_0 : i32, i32
  }
  func.func @transform_12(%arg0: i32) -> (i32, i32) {
    %c0_i32 = arith.constant 0 : i32
    %c0_i32_0 = arith.constant 0 : i32
    %c0_i32_1 = arith.constant 0 : i32
    return %c0_i32, %c0_i32_0 : i32, i32
  }
  func.func @transform_13(%arg0: i32) -> (i32, i32) {
    %c0_i32 = arith.constant 0 : i32
    %c0_i32_0 = arith.constant 0 : i32
    return %c0_i32, %arg0 : i32, i32
  }
}

</mosaic_0001>

<bundles_post_ra>
// kernel: net_forward.1
= control target key start
LH: loop header
LB: loop body
LE: loop exit
PB: predicated region body
PF: predicated region fallthrough
CT: control target
= control target key end

     0   :  { %s1707_s27 = smov 0   ;;  %s1980_s0 = inlined_call_operand.vmem [shape: f32[2,4096], index: 0, kind: input, shape index: {}]   ;;  %s1981_s1 = inlined_call_operand.vmem [shape: f32[40,2], index: 1, kind: input, shape index: {}]   ;;  %s1982_s2 = inlined_call_operand.vmem [shape: f32[40,1], index: 2, kind: input, shape index: {}]   ;;  %s1983_s3 = inlined_call_operand.vmem [shape: f32[40,40], index: 3, kind: input, shape index: {}]   ;;  %s1984_s4 = inlined_call_operand.vmem [shape: f32[40,1], index: 4, kind: input, shape index: {}]   ;;  %s1985_s5 = inlined_call_operand.vmem [shape: f32[40,40], index: 5, kind: input, shape index: {}]   ;;  %s1986_s6 = inlined_call_operand.vmem [shape: f32[40,1], index: 6, kind: input, shape index: {}]   ;;  %s1987_s7 = inlined_call_operand.vmem [shape: f32[40,40], index: 7, kind: input, shape index: {}]   ;;  %s1988_s8 = inlined_call_operand.vmem [shape: f32[40,1], index: 8, kind: input, shape index: {}]   ;;  %s1989_s9 = inlined_call_operand.vmem [shape: f32[40,40], index: 9, kind: input, shape index: {}]   ;;  %s1990_s10 = inlined_call_operand.vmem [shape: f32[40,1], index: 10, kind: input, shape index: {}]   ;;  %s1991_s11 = inlined_call_operand.vmem [shape: f32[1,40], index: 11, kind: input, shape index: {}]   ;;  %s1992_s12 = inlined_call_operand.<no memory space> [shape: f32[1,1], index: 12, kind: input, shape index: {}]   ;;  %s1993_s13 = inlined_call_operand.vmem [shape: f32[1,4096], index: 13, kind: output, shape index: {}]  }
   0x1   :  { %v18_v0 = vstv %s1992_s12 }
   0x2   :  { %19 = vst [vmem:[#allocation2] sm:$0x1] %v18_v0 }
   0x3 LB: > { %s1411_s28 = sadd.s32 4294967295, %s1624_s27   ;;  %p1415_p0 = scmp.ge.s32.totalorder %s1624_s27, 1  ;;  %s1624_s27 = sphi %s1707_s27, %s25_s27  }
   0x4   : > { %p390_p1 = scmp.lt.s32.totalorder %s1624_s27, 3 }
   0x6   : > { %p391_p2 = pnand %p1415_p0, %p390_p1 }
   0x7   : > { %s1416_s29 = sshll.u32 (!%p391_p2), %s1411_s28, 4  ;;  %s1727_s19 = smov (!%p391_p2), 0  }
   0x8   : > { %394 = sbr.rel (%p391_p2) target bundleno = 1409 (0x581), region = 72  ;;  %p434_p3 = scmp.lt.s32.totalorder (!%p391_p2), %s1416_s29, 31 }
   0xf   : > { %s1995_s29 = smov (!%p434_p3, %s1416_s29), 31 }
  0x10   : > { %s1417_s12 = sshll.u32 %s1995_s29, 1  ;;  %s442_s15 = scalar_lea.vmem %s1993_s13, %s1995_s29 }
  0x11   : > { %s1725_s18 = scalar_lea.vmem %s1980_s0, %s1417_s12 }
  0x12 LB: >> { %v461_v1 = vld [vmem:[%s1982_s2] sm:$0xff]  ;;  %v1630_v3 = vmov 0   ;;  %v462_v4 = vld [vmem:[%s1982_s2 + $0x8] sm:$0xff]  ;;  %v459_v6 = vld [vmem:[%s1981_s1 + $0x18] sm:$0xff]  ;;  %v1631_v7 = vmov 1   ;;  %v1632_v21 = vmov 0.0   ;;  %v492_v35 = vlaneseq  ;;  %s1628_s19 = sphi %s1727_s19, %s449_s19  }
  0x13   : >> { %v456_v2 = vld [vmem:[%s1981_s1] sm:$0xff]  ;;  %1505 = vset.pattern.permute.xlu1 %v1630_v3  ;;  %1504 = vset.pattern.permute.xlu0 %v1630_v3  ;;  %v457_v5 = vld [vmem:[%s1981_s1 + $0x8] sm:$0xff]  ;;  %v458_v8 = vld [vmem:[%s1981_s1 + $0x10] sm:$0xff]  ;;  %s1419_s12 = sshll.u32 %s1628_s19, 8  ;;  %vm658_vm0 = vcmask 326656   ;;  %s449_s19 = sadd.s32 1, %s1628_s19  }
  0x14   : >> { %522 = vperm.xlu1 %1505, %v461_v1   ;;  %468 = vperm.xlu0 %1504, %v456_v2   ;;  %v463_v9 = vld [vmem:[%s1982_s2 + $0x10] sm:$0xff]  ;;  %v464_v10 = vld [vmem:[%s1982_s2 + $0x18] sm:$0xff]  ;;  %v465_v11 = vld [vmem:[%s1982_s2 + $0x20] sm:$0xff]  ;;  %s1825_s30 = sshra.s32 %s1419_s12, 7  ;;  %v1829_v36 = vshrl.u32 %v492_v35, 7  ;;  %vm1350_vm1 = vcmp.lt.s32.totalorder %v492_v35, 256 }
  0x15   : >> { %v629_v12 = vld [vmem:[%s1984_s4 + $0x8] sm:$0xff]  ;;  %v631_v13 = vld [vmem:[%s1984_s4 + $0x18] sm:$0xff]  ;;  %v460_v14 = vld [vmem:[%s1981_s1 + $0x20] sm:$0xff]  ;;  %738 = vmatprep.mubr.f32.mxu0 %v1632_v21  ;;  %893 = vmatprep.mubr.f32.mxu1 %v1632_v21  ;;  %s1420_s14 = sshll.u32 %s1825_s30, 1  ;;  %s1347_s28 = scalar_lea.vmem %s442_s15, %s1825_s30 }
  0x16   : >> { %v784_v15 = vld [vmem:[%s1986_s6] sm:$0xff]  ;;  %v786_v16 = vld [vmem:[%s1986_s6 + $0x10] sm:$0xff]  ;;  %v940_v18 = vld [vmem:[%s1988_s8 + $0x8] sm:$0xff]  ;;  %s454_s16 = scalar_lea.vmem %s1725_s18, %s1420_s14  ;;  %v1833_v37 = vsub.s32 0, %v1829_v36  ;;  %v498_v38 = vsub.s32 2, %v1829_v36  ;;  %v577_v40 = vsub.s32 1, %v1829_v36 }
  0x17   : >> { %v788_v17 = vld [vmem:[%s1986_s6 + $0x20] sm:$0xff]  ;;  %v942_v19 = vld [vmem:[%s1988_s8 + $0x18] sm:$0xff]  ;;  %v1096_v22 = vld [vmem:[%s1990_s10 + $0x10] sm:$0xff]  ;;  %v581_v41 = vsub.s32 3, %v1829_v36  ;;  %p446_p4 = scmp.ge.s32.totalorder %s449_s19, 8  }
  0x18   : >> { %527 = vperm.xlu1 %1505, %v462_v4   ;;  %473 = vperm.xlu0 %1504, %v457_v5   ;;  %v1094_v20 = vld [vmem:[%s1990_s10] sm:$0xff]  ;;  %v630_v25 = vld [vmem:[%s1984_s4 + $0x10] sm:$0xff]  ;;  %v785_v27 = vld [vmem:[%s1986_s6 + $0x8] sm:$0xff] }
  0x19   : >> { %v1098_v23 = vld [vmem:[%s1990_s10 + $0x20] sm:$0xff]  ;;  %v787_v28 = vld [vmem:[%s1986_s6 + $0x18] sm:$0xff]  ;;  %v941_v30 = vld [vmem:[%s1988_s8 + $0x10] sm:$0xff] }
  0x1a   : >> { %v628_v24 = vld [vmem:[%s1984_s4] sm:$0xff]  ;;  %v1095_v32 = vld [vmem:[%s1990_s10 + $0x8] sm:$0xff]  ;;  %v1097_v33 = vld [vmem:[%s1990_s10 + $0x18] sm:$0xff] }
  0x1b   : >> { %v632_v26 = vld [vmem:[%s1984_s4 + $0x20] sm:$0xff] }
  0x1c   : >> { %1506 = vset.pattern.permute.xlu1 %v1631_v7  ;;  %483 = vperm.xlu0 %1504, %v459_v6   ;;  %v939_v29 = vld [vmem:[%s1988_s8] sm:$0xff] }
  0x1d   : >> { %560 = vperm.xlu1 %1506, %v457_v5   ;;  %v943_v31 = vld [vmem:[%s1988_s8 + $0x20] sm:$0xff] }
  0x1e   : >> { %v1245_v34 = vld [vmem:[#allocation2] sm:$0x1] }
  0x1f   : >> { %v455_v39 = vld [vmem:[%s454_s16] sm:$0xf] }
  0x20   : >> { %1508 = vset.pattern.permute.xlu0 %v1631_v7  ;;  %v495_v44 = vrot.slane %v455_v39, %v1833_v37  ;;  %v499_v45 = vrot.slane %v455_v39, %v498_v38  ;;  %v578_v46 = vrot.slane %v455_v39, %v577_v40  ;;  %v582_v47 = vrot.slane %v455_v39, %v581_v41 }
  0x21   : >> { %1507 = vset.pattern.permute.xlu1 %v1630_v3  ;;  %556 = vperm.xlu0 %1508, %v456_v2  }
  0x22   : >> { %478 = vperm.xlu1 %1507, %v458_v8   ;;  %v1840_v48 = vrot.slane %v495_v44, %v1833_v37  ;;  %v509_v51 = vrot.slane %v499_v45, %v1833_v37  ;;  %v1844_v53 = vrot.slane %v578_v46, %v577_v40  ;;  %v1846_v54 = vrot.slane %v582_v47, %v577_v40 }
  0x25   : >> { %564 = vperm.xlu0 %1508, %v458_v8  }
  0x26   : >> { %532 = vperm.xlu1 %1507, %v463_v9  }
  0x29   : >> { %1511 = vset.pattern.permute.xlu0 %v1630_v3 }
  0x2a   : >> { %537 = vperm.xlu1 %1507, %v464_v10   ;;  %542 = vperm.xlu0 %1511, %v465_v11  }
  0x2e   : >> { %1509 = vset.pattern.permute.xlu1 %v1631_v7  ;;  %640 = vperm.xlu0 %1511, %v629_v12  }
  0x2f   : >> { %568 = vperm.xlu1 %1509, %v459_v6  }
  0x32   : >> { %650 = vperm.xlu0 %1511, %v631_v13  }
  0x33   : >> { %1510 = vset.pattern.permute.xlu1 %v1630_v3 }
  0x34   : >> { %488 = vperm.xlu1 %1510, %v460_v14  }
  0x36   : >> { %791 = vperm.xlu0 %1511, %v784_v15  }
  0x38   : >> { %1512 = vset.pattern.permute.xlu1 %v1631_v7 }
  0x39   : >> { %572 = vperm.xlu1 %1512, %v460_v14  }
  0x3a   : >> { %801 = vperm.xlu0 %1511, %v786_v16  }
  0x3d   : >> { %1513 = vset.pattern.permute.xlu1 %v1630_v3 }
  0x3e   : >> { %811 = vperm.xlu0 %1511, %v788_v17   ;;  %635 = vperm.xlu1 %1513, %v628_v24  }
  0x42   : >> { %951 = vperm.xlu0 %1511, %v940_v18   ;;  %645 = vperm.xlu1 %1513, %v630_v25  }
  0x46   : >> { %961 = vperm.xlu0 %1511, %v942_v19   ;;  %655 = vperm.xlu1 %1513, %v632_v26  }
  0x4a   : >> { %1101 = vperm.xlu0 %1511, %v1094_v20   ;;  %796 = vperm.xlu1 %1513, %v785_v27  }
  0x4e   : >> { %1111 = vperm.xlu0 %1511, %v1096_v22   ;;  %806 = vperm.xlu1 %1513, %v787_v28  }
  0x52   : >> { %1121 = vperm.xlu0 %1511, %v1098_v23   ;;  %946 = vperm.xlu1 %1513, %v939_v29  }
  0x56   : >> { %956 = vperm.xlu1 %1513, %v941_v30  }
  0x5a   : >> { %966 = vperm.xlu1 %1513, %v943_v31  }
  0x5e   : >> { %1106 = vperm.xlu1 %1513, %v1095_v32  }
  0x62   : >> { %1116 = vperm.xlu1 %1513, %v1097_v33  }
  0x66   : >> { %1248 = vperm.xlu1 %1513, %v1245_v34  }
  0x93   : >> { %v523_v42 = vpop.permute.xlu1 %522  ;;  %v469_v43 = vpop.permute.xlu0 %468 }
  0x94   : >> { %v510_v57 = vmul.f32 %v1840_v48, %v469_v43  ;;  %v511_v59 = vmul.f32 %v509_v51, %v469_v43 }
  0x96   : >> { %v545_v3 = vadd.f32 %v523_v42, %v510_v57  ;;  %v546_v4 = vadd.f32 %v523_v42, %v511_v59 }
  0x97   : >> { %v528_v49 = vpop.permute.xlu1 %527  ;;  %v474_v50 = vpop.permute.xlu0 %473 }
  0x98   : >> { %v512_v52 = vmul.f32 %v1840_v48, %v474_v50  ;;  %v513_v55 = vmul.f32 %v509_v51, %v474_v50 }
  0x9a   : >> { %v547_v60 = vadd.f32 %v528_v49, %v512_v52  ;;  %v548_v63 = vadd.f32 %v528_v49, %v513_v55 }
  0x9b   : >> { %v484_v56 = vpop.permute.xlu0 %483 }
  0x9c   : >> { %v561_v58 = vpop.permute.xlu1 %560  ;;  %v516_v20 = vmul.f32 %v1840_v48, %v484_v56  ;;  %v517_v22 = vmul.f32 %v509_v51, %v484_v56 }
  0x9d   : >> { %v595_v61 = vmul.f32 %v1844_v53, %v561_v58  ;;  %v596_v62 = vmul.f32 %v1846_v54, %v561_v58 }
  0x9f   : >> { %v605_v0 = vadd.f32 %v595_v61, %v547_v60  ;;  %v606_v1 = vadd.f32 %v596_v62, %v548_v63  ;;  %v625_v61 = vld [vmem:[%s1983_s3 + $0x10] sm:$0xff]  ;;  %v626_v62 = vld [vmem:[%s1983_s3 + $0x18] sm:$0xff]  ;;  %v627_v63 = vld [vmem:[%s1983_s3 + $0x20] sm:$0xff] }
  0xa0   : >> { %v557_v2 = vpop.permute.xlu0 %556 }
  0xa1   : >> { %v593_v5 = vmul.f32 %v1844_v53, %v557_v2  ;;  %v594_v6 = vmul.f32 %v1846_v54, %v557_v2  ;;  %v479_v7 = vpop.permute.xlu1 %478  ;;  %1514 = vtanh.f32 %v605_v0 }
  0xa2   : >> { %1516 = vtanh.f32 %v606_v1  ;;  %v514_v12 = vmul.f32 %v1840_v48, %v479_v7  ;;  %v515_v13 = vmul.f32 %v509_v51, %v479_v7 }
  0xa3   : >> { %v603_v8 = vadd.f32 %v593_v5, %v545_v3  ;;  %v604_v9 = vadd.f32 %v594_v6, %v546_v4 }
  0xa4   : >> { %v565_v11 = vpop.permute.xlu0 %564 }
  0xa5   : >> { %1518 = vtanh.f32 %v603_v8  ;;  %v533_v10 = vpop.permute.xlu1 %532  ;;  %v597_v15 = vmul.f32 %v1844_v53, %v565_v11  ;;  %v598_v18 = vmul.f32 %v1846_v54, %v565_v11 }
  0xa6   : >> { %1520 = vtanh.f32 %v604_v9  ;;  %v549_v14 = vadd.f32 %v533_v10, %v514_v12  ;;  %v550_v17 = vadd.f32 %v533_v10, %v515_v13 }
  0xa8   : >> { %v607_v23 = vadd.f32 %v597_v15, %v549_v14  ;;  %v608_v25 = vadd.f32 %v598_v18, %v550_v17 }
  0xa9   : >> { %v538_v16 = vpop.permute.xlu1 %537  ;;  %v543_v43 = vpop.permute.xlu0 %542 }
  0xaa   : >> { %v551_v28 = vadd.f32 %v538_v16, %v516_v20  ;;  %v552_v29 = vadd.f32 %v538_v16, %v517_v22  ;;  %1522 = vtanh.f32 %v607_v23 }
  0xab   : >> { %v1515_v19 = vpop.eup %1514  ;;  %1524 = vtanh.f32 %v608_v25 }
  0xac   : >> { %v1517_v24 = vpop.eup %1516 }
  0xad   : >> { %v641_v5 = vpop.permute.xlu0 %640 }
  0xae   : >> { %v569_v26 = vpop.permute.xlu1 %568 }
  0xaf   : >> { %v1519_v27 = vpop.eup %1518  ;;  %v599_v30 = vmul.f32 %v1844_v53, %v569_v26  ;;  %v600_v31 = vmul.f32 %v1846_v54, %v569_v26 }
  0xb0   : >> { %v1521_v32 = vpop.eup %1520  ;;  %v1446_v33 = vpack.c.bf16 %v1515_v19, %v1519_v27 }
  0xb1   : >> { %v609_v34 = vadd.f32 %v599_v30, %v551_v28  ;;  %v610_v38 = vadd.f32 %v600_v31, %v552_v29  ;;  %v1444_v39 = vpack.c.bf16 %v1517_v24, %v1521_v32  ;;  %v651_v15 = vpop.permute.xlu0 %650 }
  0xb3   : >> { %1526 = vtanh.f32 %v609_v34  ;;  %1445 = vmatprep.subr.bf16.mxu0 %v1444_v39  ;;  %v489_v40 = vpop.permute.xlu1 %488 }
  0xb4   : >> { %1528 = vtanh.f32 %v610_v38  ;;  %1447 = vmatpush1.bf16.msra.mxu0 %v1446_v33  ;;  %v518_v41 = vmul.f32 %v1840_v48, %v489_v40  ;;  %v519_v42 = vmul.f32 %v509_v51, %v489_v40  ;;  %v1523_v50 = vpop.eup %1522 }
  0xb5   : >> { %v1525_v56 = vpop.eup %1524 }
  0xb6   : >> { %v553_v45 = vadd.f32 %v543_v43, %v518_v41  ;;  %v554_v46 = vadd.f32 %v543_v43, %v519_v42  ;;  %v779_v42 = vld [vmem:[%s1985_s5] sm:$0xff] }
  0xb8   : >> { %v573_v44 = vpop.permute.xlu1 %572 }
  0xb9   : >> { %v601_v47 = vmul.f32 %v1844_v53, %v573_v44  ;;  %v602_v49 = vmul.f32 %v1846_v54, %v573_v44  ;;  %v623_v53 = vld [vmem:[%s1983_s3] sm:$0xff]  ;;  %v624_v54 = vld [vmem:[%s1983_s3 + $0x8] sm:$0xff] }
  0xba   : >> { %v780_v44 = vld [vmem:[%s1985_s5 + $0x8] sm:$0xff] }
  0xbb   : >> { %v611_v52 = vadd.f32 %v601_v47, %v553_v45  ;;  %v612_v55 = vadd.f32 %v602_v49, %v554_v46  ;;  %v781_v45 = vld [vmem:[%s1985_s5 + $0x10] sm:$0xff]  ;;  %v782_v46 = vld [vmem:[%s1985_s5 + $0x18] sm:$0xff]  ;;  %v783_v47 = vld [vmem:[%s1985_s5 + $0x20] sm:$0xff]  ;;  %v792_v49 = vpop.permute.xlu0 %791 }
  0xbd   : >> { %v1527_v57 = vpop.eup %1526  ;;  %1530 = vtanh.f32 %v611_v52  ;;  %v636_v0 = vpop.permute.xlu1 %635 }
  0xbe   : >> { %v1529_v58 = vpop.eup %1528  ;;  %1532 = vtanh.f32 %v612_v55  ;;  %v1450_v59 = vpack.c.bf16 %v1527_v57, %v1523_v50 }
  0xbf   : >> { %v1448_v60 = vpack.c.bf16 %v1529_v58, %v1525_v56 }
  0xc1   : >> { %1449 = vmatprep.subr.bf16.mxu0 %v1448_v60  ;;  %v646_v10 = vpop.permute.xlu1 %645 }
  0xc2   : >> { %1451 = vmatpush1.bf16.msra.mxu0 %v1450_v59 }
  0xc5   : >> { %v656_v25 = vpop.permute.xlu1 %655 }
  0xc7   : >> { %v1531_v48 = vpop.eup %1530 }
  0xc8   : >> { %v1533_v51 = vpop.eup %1532 }
  0xc9   : >> { %682 = vmatprep.subr.mxu0 %v1533_v51  ;;  %v797_v57 = vpop.permute.xlu1 %796  ;;  %v802_v51 = vpop.permute.xlu0 %801 }
  0xca   : >> { %683 = vmatpush1.msra.mxu0 %v1531_v48 }
  0xcb   : >> { %1421 = vmatmul.mubr.msk.f32.vlgmr.msra.gmra.mrb[0].mxu0 %vm658_vm0, %v623_v53 }
  0xcc   : >> { %744 = vmatprep.mubr.f32.mxu0 %v1632_v21 }
  0xcf   : >> { %1422 = vmatmul.mubr.msk.f32.gmra.mrb[2].mxu0 %vm658_vm0, %v624_v54 }
  0xd0   : >> { %750 = vmatprep.mubr.f32.mxu0 %v1632_v21 }
  0xd3   : >> { %1423 = vmatmul.mubr.msk.f32.gmra.mrb[4].mxu0 %vm658_vm0, %v625_v61 }
  0xd4   : >> { %756 = vmatprep.mubr.f32.mxu0 %v1632_v21 }
  0xd7   : >> { %1424 = vmatmul.mubr.msk.f32.gmra.mrb[6].mxu0 %vm658_vm0, %v626_v62 }
  0xd8   : >> { %762 = vmatprep.mubr.f32.mxu0 %v1632_v21 }
  0xdb   : >> { %1425 = vmatmul.mubr.msk.f32.gmra.mrb[8].mxu0 %vm658_vm0, %v627_v63  ;;  %v807_v63 = vpop.permute.xlu1 %806 }
  0xdc   : >> { %1048 = vmatprep.mubr.f32.mxu0 %v1632_v21 }
 0x19e   : >> { %v740_v1 = vpop.f32.mrb[0].mxu0 }
 0x19f   : >> { %v741_v2 = vadd.f32 %v740_v1, %v636_v0  ;;  %v742_v3 = vpop.f32.mrb[1].mxu0 }
 0x1a0   : >> { %v743_v4 = vadd.f32 %v742_v3, %v636_v0 }
 0x1a1   : >> { %1534 = vtanh.f32 %v741_v2 }
 0x1a2   : >> { %v746_v6 = vpop.f32.mrb[2].mxu0  ;;  %1536 = vtanh.f32 %v743_v4 }
 0x1a3   : >> { %v747_v7 = vadd.f32 %v746_v6, %v641_v5  ;;  %v748_v8 = vpop.f32.mrb[3].mxu0 }
 0x1a4   : >> { %v749_v9 = vadd.f32 %v748_v8, %v641_v5  ;;  %v812_v8 = vpop.permute.xlu0 %811 }
 0x1a5   : >> { %1538 = vtanh.f32 %v747_v7 }
 0x1a6   : >> { %1540 = vtanh.f32 %v749_v9  ;;  %v752_v11 = vpop.f32.mrb[4].mxu0 }
 0x1a7   : >> { %v753_v12 = vadd.f32 %v752_v11, %v646_v10  ;;  %v754_v13 = vpop.f32.mrb[5].mxu0 }
 0x1a8   : >> { %v755_v14 = vadd.f32 %v754_v13, %v646_v10 }
 0x1a9   : >> { %1542 = vtanh.f32 %v753_v12 }
 0x1aa   : >> { %v758_v16 = vpop.f32.mrb[6].mxu0  ;;  %1544 = vtanh.f32 %v755_v14 }
 0x1ab   : >> { %v759_v17 = vadd.f32 %v758_v16, %v651_v15  ;;  %v760_v18 = vpop.f32.mrb[7].mxu0  ;;  %v1535_v20 = vpop.eup %1534 }
 0x1ac   : >> { %v761_v19 = vadd.f32 %v760_v18, %v651_v15  ;;  %v1537_v22 = vpop.eup %1536 }
 0x1ad   : >> { %1546 = vtanh.f32 %v759_v17 }
 0x1ae   : >> { %1548 = vtanh.f32 %v761_v19  ;;  %v764_v23 = vpop.f32.mrb[8].mxu0 }
 0x1af   : >> { %v1539_v24 = vpop.eup %1538  ;;  %v766_v26 = vpop.f32.mrb[9].mxu0  ;;  %v765_v30 = vadd.f32 %v764_v23, %v656_v25  ;;  %v934_v23 = vld [vmem:[%s1987_s7] sm:$0xff] }
 0x1b0   : >> { %v1541_v27 = vpop.eup %1540  ;;  %v767_v28 = vadd.f32 %v766_v26, %v656_v25  ;;  %v1454_v29 = vpack.c.bf16 %v1539_v24, %v1535_v20  ;;  %v935_v25 = vld [vmem:[%s1987_s7 + $0x8] sm:$0xff]  ;;  %v936_v26 = vld [vmem:[%s1987_s7 + $0x10] sm:$0xff] }
 0x1b1   : >> { %v1452_v31 = vpack.c.bf16 %v1541_v27, %v1537_v22  ;;  %v937_v27 = vld [vmem:[%s1987_s7 + $0x18] sm:$0xff] }
 0x1b2   : >> { %1550 = vtanh.f32 %v767_v28  ;;  %v938_v28 = vld [vmem:[%s1987_s7 + $0x20] sm:$0xff] }
 0x1b3   : >> { %1453 = vmatprep.subr.bf16.mxu1 %v1452_v31  ;;  %v1543_v32 = vpop.eup %1542  ;;  %1552 = vtanh.f32 %v765_v30 }
 0x1b4   : >> { %1455 = vmatpush1.bf16.msra.mxu1 %v1454_v29  ;;  %v1545_v33 = vpop.eup %1544  ;;  %v947_v29 = vpop.permute.xlu1 %946 }
 0x1b7   : >> { %v1547_v34 = vpop.eup %1546 }
 0x1b8   : >> { %v1549_v38 = vpop.eup %1548  ;;  %v1458_v39 = vpack.c.bf16 %v1547_v34, %v1543_v32  ;;  %v952_v34 = vpop.permute.xlu0 %951 }
 0x1b9   : >> { %v1456_v40 = vpack.c.bf16 %v1549_v38, %v1545_v33 }
 0x1bb   : >> { %1457 = vmatprep.subr.bf16.mxu1 %v1456_v40 }
 0x1bc   : >> { %v1551_v41 = vpop.eup %1550  ;;  %1459 = vmatpush1.bf16.msra.mxu1 %v1458_v39 }
 0x1bd   : >> { %837 = vmatprep.subr.mxu1 %v1551_v41  ;;  %v1553_v43 = vpop.eup %1552 }
 0x1c0   : >> { %838 = vmatpush1.msra.mxu1 %v1553_v43 }
 0x1c1   : >> { %1426 = vmatmul.mubr.msk.f32.vlgmr.msra.gmra.mrb[0].mxu1 %vm658_vm0, %v779_v42  ;;  %v957_v42 = vpop.permute.xlu1 %956 }
 0x1c2   : >> { %899 = vmatprep.mubr.f32.mxu1 %v1632_v21 }
 0x1c5   : >> { %1427 = vmatmul.mubr.msk.f32.gmra.mrb[2].mxu1 %vm658_vm0, %v780_v44 }
 0x1c6   : >> { %905 = vmatprep.mubr.f32.mxu1 %v1632_v21 }
 0x1c9   : >> { %1428 = vmatmul.mubr.msk.f32.gmra.mrb[4].mxu1 %vm658_vm0, %v781_v45 }
 0x1ca   : >> { %911 = vmatprep.mubr.f32.mxu1 %v1632_v21 }
 0x1cd   : >> { %1429 = vmatmul.mubr.msk.f32.gmra.mrb[6].mxu1 %vm658_vm0, %v782_v46 }
 0x1ce   : >> { %917 = vmatprep.mubr.f32.mxu1 %v1632_v21 }
 0x1d1   : >> { %1430 = vmatmul.mubr.msk.f32.gmra.mrb[8].mxu1 %vm658_vm0, %v783_v47  ;;  %v962_v47 = vpop.permute.xlu0 %961 }
 0x1d2   : >> { %1203 = vmatprep.mubr.f32.mxu1 %v1632_v21 }
 0x294   : >> { %v895_v50 = vpop.f32.mrb[0].mxu1 }
 0x295   : >> { %v896_v52 = vadd.f32 %v895_v50, %v792_v49  ;;  %v897_v55 = vpop.f32.mrb[1].mxu1 }
 0x296   : >> { %v898_v56 = vadd.f32 %v897_v55, %v792_v49 }
 0x297   : >> { %1554 = vtanh.f32 %v896_v52 }
 0x298   : >> { %v901_v58 = vpop.f32.mrb[2].mxu1  ;;  %1556 = vtanh.f32 %v898_v56 }
 0x299   : >> { %v902_v59 = vadd.f32 %v901_v58, %v797_v57  ;;  %v903_v60 = vpop.f32.mrb[3].mxu1 }
 0x29a   : >> { %v904_v48 = vadd.f32 %v903_v60, %v797_v57  ;;  %v967_v60 = vpop.permute.xlu1 %966 }
 0x29b   : >> { %1558 = vtanh.f32 %v902_v59 }
 0x29c   : >> { %1560 = vtanh.f32 %v904_v48  ;;  %v907_v53 = vpop.f32.mrb[4].mxu1 }
 0x29d   : >> { %v908_v54 = vadd.f32 %v907_v53, %v802_v51  ;;  %v909_v61 = vpop.f32.mrb[5].mxu1 }
 0x29e   : >> { %v910_v62 = vadd.f32 %v909_v61, %v802_v51 }
 0x29f   : >> { %1562 = vtanh.f32 %v908_v54 }
 0x2a0   : >> { %v913_v0 = vpop.f32.mrb[6].mxu1  ;;  %1564 = vtanh.f32 %v910_v62 }
 0x2a1   : >> { %v914_v1 = vadd.f32 %v913_v0, %v807_v63  ;;  %v915_v2 = vpop.f32.mrb[7].mxu1  ;;  %v1555_v4 = vpop.eup %1554 }
 0x2a2   : >> { %v916_v3 = vadd.f32 %v915_v2, %v807_v63  ;;  %v1557_v5 = vpop.eup %1556 }
 0x2a3   : >> { %1566 = vtanh.f32 %v914_v1 }
 0x2a4   : >> { %1568 = vtanh.f32 %v916_v3  ;;  %v919_v6 = vpop.f32.mrb[8].mxu1 }
 0x2a5   : >> { %v1559_v7 = vpop.eup %1558  ;;  %v921_v9 = vpop.f32.mrb[9].mxu1  ;;  %v920_v13 = vadd.f32 %v919_v6, %v812_v8  ;;  %v1089_v6 = vld [vmem:[%s1989_s9] sm:$0xff] }
 0x2a6   : >> { %v1561_v10 = vpop.eup %1560  ;;  %v922_v11 = vadd.f32 %v921_v9, %v812_v8  ;;  %v1462_v12 = vpack.c.bf16 %v1559_v7, %v1555_v4  ;;  %v1090_v8 = vld [vmem:[%s1989_s9 + $0x8] sm:$0xff]  ;;  %v1091_v9 = vld [vmem:[%s1989_s9 + $0x10] sm:$0xff] }
 0x2a7   : >> { %v1460_v14 = vpack.c.bf16 %v1561_v10, %v1557_v5  ;;  %v1092_v10 = vld [vmem:[%s1989_s9 + $0x18] sm:$0xff] }
 0x2a8   : >> { %1570 = vtanh.f32 %v922_v11  ;;  %v1093_v11 = vld [vmem:[%s1989_s9 + $0x20] sm:$0xff] }
 0x2a9   : >> { %1461 = vmatprep.subr.bf16.mxu0 %v1460_v14  ;;  %v1563_v15 = vpop.eup %1562  ;;  %1572 = vtanh.f32 %v920_v13 }
 0x2aa   : >> { %1463 = vmatpush1.bf16.msra.mxu0 %v1462_v12  ;;  %v1565_v16 = vpop.eup %1564  ;;  %v1102_v12 = vpop.permute.xlu0 %1101 }
 0x2ad   : >> { %v1567_v17 = vpop.eup %1566 }
 0x2ae   : >> { %v1569_v18 = vpop.eup %1568  ;;  %v1466_v19 = vpack.c.bf16 %v1567_v17, %v1563_v15  ;;  %v1107_v17 = vpop.permute.xlu1 %1106 }
 0x2af   : >> { %v1464_v20 = vpack.c.bf16 %v1569_v18, %v1565_v16 }
 0x2b1   : >> { %1465 = vmatprep.subr.bf16.mxu0 %v1464_v20 }
 0x2b2   : >> { %v1571_v22 = vpop.eup %1570  ;;  %1467 = vmatpush1.bf16.msra.mxu0 %v1466_v19 }
 0x2b3   : >> { %992 = vmatprep.subr.mxu0 %v1571_v22  ;;  %v1573_v24 = vpop.eup %1572 }
 0x2b6   : >> { %993 = vmatpush1.msra.mxu0 %v1573_v24 }
 0x2b7   : >> { %1431 = vmatmul.mubr.msk.f32.vlgmr.msra.gmra.mrb[10].mxu0 %vm658_vm0, %v934_v23 }
 0x2b8   : >> { %1054 = vmatprep.mubr.f32.mxu0 %v1632_v21 }
 0x2bb   : >> { %1432 = vmatmul.mubr.msk.f32.gmra.mrb[12].mxu0 %vm658_vm0, %v935_v25 }
 0x2bc   : >> { %1060 = vmatprep.mubr.f32.mxu0 %v1632_v21 }
 0x2bf   : >> { %1433 = vmatmul.mubr.msk.f32.gmra.mrb[14].mxu0 %vm658_vm0, %v936_v26 }
 0x2c0   : >> { %1066 = vmatprep.mubr.f32.mxu0 %v1632_v21 }
 0x2c3   : >> { %1434 = vmatmul.mubr.msk.f32.gmra.mrb[16].mxu0 %vm658_vm0, %v937_v27  ;;  %v1117_v27 = vpop.permute.xlu1 %1116 }
 0x2c4   : >> { %1072 = vmatprep.mubr.f32.mxu0 %v1632_v21 }
 0x2c7   : >> { %1435 = vmatmul.mubr.msk.f32.gmra.mrb[18].mxu0 %vm658_vm0, %v938_v28 }
 0x2c8   : >> { %1322 = vmatprep.mubr.f32.mxu0 %v1632_v21 }
 0x38a   : >> { %v1050_v30 = vpop.f32.mrb[10].mxu0 }
 0x38b   : >> { %v1051_v31 = vadd.f32 %v1050_v30, %v947_v29  ;;  %v1052_v32 = vpop.f32.mrb[11].mxu0 }
 0x38c   : >> { %v1053_v33 = vadd.f32 %v1052_v32, %v947_v29 }
 0x38d   : >> { %1574 = vtanh.f32 %v1051_v31 }
 0x38e   : >> { %v1056_v38 = vpop.f32.mrb[12].mxu0  ;;  %1576 = vtanh.f32 %v1053_v33 }
 0x38f   : >> { %v1057_v39 = vadd.f32 %v1056_v38, %v952_v34  ;;  %v1058_v40 = vpop.f32.mrb[13].mxu0 }
 0x390   : >> { %v1059_v41 = vadd.f32 %v1058_v40, %v952_v34 }
 0x391   : >> { %1578 = vtanh.f32 %v1057_v39 }
 0x392   : >> { %1580 = vtanh.f32 %v1059_v41  ;;  %v1062_v43 = vpop.f32.mrb[14].mxu0 }
 0x393   : >> { %v1063_v44 = vadd.f32 %v1062_v43, %v957_v42  ;;  %v1064_v45 = vpop.f32.mrb[15].mxu0 }
 0x394   : >> { %v1065_v46 = vadd.f32 %v1064_v45, %v957_v42 }
 0x395   : >> { %1582 = vtanh.f32 %v1063_v44 }
 0x396   : >> { %v1068_v49 = vpop.f32.mrb[16].mxu0  ;;  %1584 = vtanh.f32 %v1065_v46 }
 0x397   : >> { %v1069_v50 = vadd.f32 %v1068_v49, %v962_v47  ;;  %v1070_v52 = vpop.f32.mrb[17].mxu0  ;;  %v1575_v56 = vpop.eup %1574 }
 0x398   : >> { %v1071_v55 = vadd.f32 %v1070_v52, %v962_v47  ;;  %v1577_v57 = vpop.eup %1576 }
 0x399   : >> { %1586 = vtanh.f32 %v1069_v50 }
 0x39a   : >> { %1588 = vtanh.f32 %v1071_v55  ;;  %v1074_v58 = vpop.f32.mrb[18].mxu0 }
 0x39b   : >> { %v1579_v59 = vpop.eup %1578  ;;  %v1076_v48 = vpop.f32.mrb[19].mxu0  ;;  %v1075_v61 = vadd.f32 %v1074_v58, %v967_v60 }
 0x39c   : >> { %v1581_v51 = vpop.eup %1580  ;;  %v1077_v53 = vadd.f32 %v1076_v48, %v967_v60  ;;  %v1470_v54 = vpack.c.bf16 %v1579_v59, %v1575_v56  ;;  %v1633_v59 = vmov 1966171168   ;;  %v1249_v48 = vpop.permute.xlu1 %1248 }
 0x39d   : >> { %v1468_v62 = vpack.c.bf16 %v1581_v51, %v1577_v57  ;;  %v1244_v57 = vld [vmem:[%s1991_s11] sm:$0x1]  ;;  %v1333_v60 = vunpack.c.l.s4 %v1633_v59 }
 0x39e   : >> { %1590 = vtanh.f32 %v1077_v53  ;;  %v1254_v53 = vrot.slane %v1249_v48, %v1833_v37 }
 0x39f   : >> { %1469 = vmatprep.subr.bf16.mxu1 %v1468_v62  ;;  %v1583_v63 = vpop.eup %1582  ;;  %1592 = vtanh.f32 %v1075_v61  ;;  %v1334_v51 = vunpack.c.0.s8 %v1333_v60 }
 0x3a0   : >> { %1471 = vmatpush1.bf16.msra.mxu1 %v1470_v54  ;;  %v1585_v0 = vpop.eup %1584 }
 0x3a3   : >> { %v1587_v1 = vpop.eup %1586 }
 0x3a4   : >> { %v1589_v2 = vpop.eup %1588  ;;  %v1474_v3 = vpack.c.bf16 %v1587_v1, %v1583_v63 }
 0x3a5   : >> { %v1472_v4 = vpack.c.bf16 %v1589_v2, %v1585_v0  ;;  %v1337_v0 = vsub.s32 %v1334_v51, %v1829_v36 }
 0x3a7   : >> { %1473 = vmatprep.subr.bf16.mxu1 %v1472_v4 }
 0x3a8   : >> { %v1591_v5 = vpop.eup %1590  ;;  %1475 = vmatpush1.bf16.msra.mxu1 %v1474_v3 }
 0x3a9   : >> { %1147 = vmatprep.subr.mxu1 %v1591_v5  ;;  %v1593_v7 = vpop.eup %1592 }
 0x3ac   : >> { %1148 = vmatpush1.msra.mxu1 %v1593_v7 }
 0x3ad   : >> { %1436 = vmatmul.mubr.msk.f32.vlgmr.msra.gmra.mrb[10].mxu1 %vm658_vm0, %v1089_v6 }
 0x3ae   : >> { %1209 = vmatprep.mubr.f32.mxu1 %v1632_v21 }
 0x3b1   : >> { %1437 = vmatmul.mubr.msk.f32.gmra.mrb[12].mxu1 %vm658_vm0, %v1090_v8 }
 0x3b2   : >> { %1215 = vmatprep.mubr.f32.mxu1 %v1632_v21 }
 0x3b5   : >> { %1438 = vmatmul.mubr.msk.f32.gmra.mrb[14].mxu1 %vm658_vm0, %v1091_v9 }
 0x3b6   : >> { %1221 = vmatprep.mubr.f32.mxu1 %v1632_v21 }
 0x3b9   : >> { %1439 = vmatmul.mubr.msk.f32.gmra.mrb[16].mxu1 %vm658_vm0, %v1092_v10 }
 0x3ba   : >> { %1227 = vmatprep.mubr.f32.mxu1 %v1632_v21  ;;  %v1112_v21 = vpop.permute.xlu0 %1111 }
 0x3bd   : >> { %1440 = vmatmul.mubr.msk.f32.gmra.mrb[18].mxu1 %vm658_vm0, %v1093_v11 }
 0x3be   : >> { %v1122_v39 = vpop.permute.xlu0 %1121 }
 0x480   : >> { %v1205_v13 = vpop.f32.mrb[10].mxu1 }
 0x481   : >> { %v1206_v14 = vadd.f32 %v1205_v13, %v1102_v12  ;;  %v1207_v15 = vpop.f32.mrb[11].mxu1 }
 0x482   : >> { %v1208_v16 = vadd.f32 %v1207_v15, %v1102_v12 }
 0x483   : >> { %1594 = vtanh.f32 %v1206_v14 }
 0x484   : >> { %v1211_v18 = vpop.f32.mrb[12].mxu1  ;;  %1596 = vtanh.f32 %v1208_v16 }
 0x485   : >> { %v1212_v19 = vadd.f32 %v1211_v18, %v1107_v17  ;;  %v1213_v20 = vpop.f32.mrb[13].mxu1 }
 0x486   : >> { %v1214_v22 = vadd.f32 %v1213_v20, %v1107_v17 }
 0x487   : >> { %1598 = vtanh.f32 %v1212_v19 }
 0x488   : >> { %1600 = vtanh.f32 %v1214_v22  ;;  %v1217_v23 = vpop.f32.mrb[14].mxu1 }
 0x489   : >> { %v1218_v24 = vadd.f32 %v1217_v23, %v1112_v21  ;;  %v1219_v25 = vpop.f32.mrb[15].mxu1 }
 0x48a   : >> { %v1220_v26 = vadd.f32 %v1219_v25, %v1112_v21 }
 0x48b   : >> { %1602 = vtanh.f32 %v1218_v24 }
 0x48c   : >> { %v1223_v28 = vpop.f32.mrb[16].mxu1  ;;  %1604 = vtanh.f32 %v1220_v26 }
 0x48d   : >> { %v1224_v29 = vadd.f32 %v1223_v28, %v1117_v27  ;;  %v1225_v30 = vpop.f32.mrb[17].mxu1  ;;  %v1595_v32 = vpop.eup %1594 }
 0x48e   : >> { %v1226_v31 = vadd.f32 %v1225_v30, %v1117_v27  ;;  %v1597_v33 = vpop.eup %1596 }
 0x48f   : >> { %1606 = vtanh.f32 %v1224_v29 }
 0x490   : >> { %1608 = vtanh.f32 %v1226_v31  ;;  %v1229_v34 = vpop.f32.mrb[18].mxu1 }
 0x491   : >> { %v1599_v38 = vpop.eup %1598  ;;  %v1231_v40 = vpop.f32.mrb[19].mxu1  ;;  %v1230_v44 = vadd.f32 %v1229_v34, %v1122_v39 }
 0x492   : >> { %v1601_v41 = vpop.eup %1600  ;;  %v1232_v42 = vadd.f32 %v1231_v40, %v1122_v39  ;;  %v1478_v43 = vpack.c.bf16 %v1599_v38, %v1595_v32 }
 0x493   : >> { %v1476_v45 = vpack.c.bf16 %v1601_v41, %v1597_v33 }
 0x494   : >> { %1610 = vtanh.f32 %v1232_v42 }
 0x495   : >> { %1477 = vmatprep.subr.bf16.mxu0 %v1476_v45  ;;  %v1603_v46 = vpop.eup %1602  ;;  %1612 = vtanh.f32 %v1230_v44 }
 0x496   : >> { %1479 = vmatpush1.bf16.msra.mxu0 %v1478_v43  ;;  %v1605_v47 = vpop.eup %1604 }
 0x499   : >> { %v1607_v49 = vpop.eup %1606 }
 0x49a   : >> { %v1609_v50 = vpop.eup %1608  ;;  %v1482_v52 = vpack.c.bf16 %v1607_v49, %v1603_v46 }
 0x49b   : >> { %v1480_v55 = vpack.c.bf16 %v1609_v50, %v1605_v47 }
 0x49d   : >> { %1481 = vmatprep.subr.bf16.mxu0 %v1480_v55 }
 0x49e   : >> { %v1611_v56 = vpop.eup %1610  ;;  %1483 = vmatpush1.bf16.msra.mxu0 %v1482_v52 }
 0x49f   : >> { %1266 = vmatprep.subr.mxu0 %v1611_v56  ;;  %v1613_v58 = vpop.eup %1612 }
 0x4a2   : >> { %1267 = vmatpush1.msra.mxu0 %v1613_v58 }
 0x4a3   : >> { %1441 = vmatmul.mubr.msk.f32.vlgmr.msra.gmra.mrb[20].mxu0 %vm658_vm0, %v1244_v57 }
 0x576   : >> { %v1324_v54 = vpop.f32.mrb[20].mxu0 }
 0x577   : >> { %v1325_v61 = vadd.f32 %v1324_v54, %v1254_v53  ;;  %v1326_v62 = vpop.f32.mrb[21].mxu0 }
 0x578   : >> { %v1327_v63 = vadd.f32 %v1326_v62, %v1254_v53 }
 0x57a   : >> { %v1331_v1 = vcombine.low %v1325_v61, %v1327_v63  ;;  %448 = sbr.rel (!%p446_p4) target bundleno = 18 (0x12), region = 111 }
 0x57c   : >> { %v1338_v2 = vrot.slane %v1331_v1, %v1337_v0 }
 0x57e   : >> { %v1345_v3 = vrot.slane %v1338_v2, %v1337_v0 }
 0x580   : >> { %1352 = vst.msk [vmem:[%s1347_s28] sm:$0x3] %vm1350_vm1, %v1345_v3 }
 0x581 PF: > { %s25_s27 = sadd.s32 1, %s1624_s27  }
 0x582   : > { %p22_p5 = scmp.ge.s32.totalorder %s25_s27, 4  }
 0x584   :  { %24 = sbr.rel (!%p22_p5) target bundleno = 3 (0x3), region = 122 }

</bundles_post_ra>
